<compile_context>
chip_gen: v7x
topology: tpu7x:2x2x1
jax: 0.10.0
libtpu: 0.0.40
codegen_flags: <defaults>
</compile_context>

<pallas_src>
import functools

import jax
import jax.numpy as jnp
from jax.experimental import pallas as pl
from jax.experimental.pallas import tpu as pltpu


def _round_up(x, m):
    return (x + m - 1) // m * m


def _row_loss_kernel(x_ref, t_ref, loss_ref, *, label_smoothing):
    """One grid step: (tile_n, C) logits + (tile_n, 1) targets -> (tile_n, 1)
    per-row smoothed cross-entropy loss (the focal epilogue runs in XLA)."""
    logits = x_ref[...].astype(jnp.float32)           # (TN, C), f32 math
    tgt = t_ref[...]                                   # (TN, 1) int32
    tn, c = logits.shape

    # Stable log-softmax pieces (3 cross-lane reductions total).
    m = jnp.max(logits, axis=-1, keepdims=True)                          # red 1
    shifted = logits - m
    lse = jnp.log(jnp.sum(jnp.exp(shifted), axis=-1, keepdims=True))     # red 2

    # Label smoothing folded into one weighted reduction:
    #   loss = -sum_c smoothed_c * (shifted_c - lse)
    #        = lse - sum_c w_c * shifted_c,  w_c = (1-ls)*[c==t] + ls/C
    ls = label_smoothing
    col = jax.lax.broadcasted_iota(jnp.int32, (tn, c), 1)
    w = jnp.where(col == tgt, 1.0 - ls + ls / c, ls / c)
    wsum = jnp.sum(w * shifted, axis=-1, keepdims=True)                  # red 3

    loss_ref[...] = lse - wsum


def optimized_focal_loss(inputs, targets, *, alpha=1.0, gamma=2.0,
                         ignore_index=-100, label_smoothing=0.1,
                         tile_n=None):
    """Forward of OptimizedFocalLoss.

    inputs : (N, C) float logits (float32 or bfloat16).
    targets: (N,)   integer class ids.
    Returns a scalar float32 loss.
    """
    n, c = inputs.shape
    in_bytes = jnp.dtype(inputs.dtype).itemsize

    # ---- VMEM budget: conservative so it is safe on v7x (64 MiB / TC) even if
    # ---- get_tpu_info reports per-chip capacity; v5e/v6e headroom is unused
    # ---- but per-step logits are already multi-MiB so it costs nothing.
    try:
        vmem_cap = int(pltpu.get_tpu_info().vmem_capacity_bytes)
    except Exception:
        vmem_cap = 64 * 1024 * 1024
    usable = min(vmem_cap, 64 * 1024 * 1024)
    vmem_limit = (usable * 3) // 4                 # ~48 MiB scoped limit
    budget = (vmem_limit * 17) // 20               # ~15% headroom for tiling

    # ---- corrected per-row VMEM estimate --------------------------------
    c_lanes = _round_up(c, 128)                    # lane padding of the block
    col_buf = 512                                  # (TN,1) buffer lane-padded to 128
    per_row = (c_lanes * (2 * in_bytes             # double-buffered logits
                          + 20)                    # ~5 live (TN,C) f32/i32 temporaries
               + 2 * col_buf                       # targets input (x2 buffers)
               + 2 * col_buf)                      # per-row loss output (x2 buffers)
    # TODO(synk): for vocab-scale C where even 8 rows exceed the budget, add an
    # inner C-chunk loop with a streaming max/LSE so the block becomes
    # (tile_n, tile_c) instead of (tile_n, C).
    auto_rows = max(8, (budget // per_row) // 8 * 8)
    if tile_n is None:
        tile_n = auto_rows
    tile_n = int(min(_round_up(int(tile_n), 8), _round_up(n, 8)))
    tile_n = max(tile_n, 8)

    grid = (pl.cdiv(n, tile_n),)
    t2 = targets.astype(jnp.int32).reshape(n, 1)

    kernel = functools.partial(_row_loss_kernel,
                               label_smoothing=float(label_smoothing))

    # NOTE: if xprof shows exposed DMA on the logits stream on v5e/v6e, add
    # pipeline_mode=pl.Buffered(3) to the logits BlockSpec (keep 2 on v7x).
    per_row_loss = pl.pallas_call(
        kernel,
        out_shape=jax.ShapeDtypeStruct((n, 1), jnp.float32),
        grid_spec=pltpu.PrefetchScalarGridSpec(
            num_scalar_prefetch=0,
            grid=grid,
            in_specs=[
                pl.BlockSpec((tile_n, c), lambda i: (i, 0)),
                pl.BlockSpec((tile_n, 1), lambda i: (i, 0)),
            ],
            out_specs=pl.BlockSpec((tile_n, 1), lambda i: (i, 0)),
        ),
        compiler_params=pltpu.CompilerParams(
            # Fully parallel grid (each step owns its output block).  If xprof
            # shows one idle TensorCore on v7x, switch to pltpu.CORE_PARALLEL.
            dimension_semantics=("parallel",),
            vmem_limit_bytes=int(vmem_limit)),
    )(inputs, t2)

    # ---- focal epilogue + mean in plain XLA over the (N,) loss vector ----
    loss = per_row_loss.reshape(n)
    pt = jnp.exp(-loss)
    one_m_pt = jnp.maximum(1.0 - pt, 0.0)          # no pow(negative) NaN hazard
    g = float(gamma)
    if g == int(g) and 0 <= int(g) <= 8:
        mod = jnp.ones_like(one_m_pt)
        for _ in range(int(g)):                    # gamma=2 -> two multiplies
            mod = mod * one_m_pt
    else:
        mod = one_m_pt ** jnp.float32(g)
    focal = jnp.float32(alpha) * mod * loss

    if ignore_index >= 0:
        mask = targets.astype(jnp.int32).reshape(n) != ignore_index
        total = jnp.sum(jnp.where(mask, focal, 0.0))
        cnt = jnp.sum(mask.astype(jnp.float32))
        return jnp.where(cnt > 0, total / cnt, total)
    # The PyTorch module only masks when ignore_index >= 0; otherwise every
    # row counts and the divisor is N (matches the spec exactly).
    return jnp.sum(focal) / n


def _reference(inputs, targets, *, alpha=1.0, gamma=2.0,
               ignore_index=-100, label_smoothing=0.1):
    n, c = inputs.shape
    onehot = jax.nn.one_hot(targets, c, dtype=jnp.float32)
    smoothed = onehot * (1.0 - label_smoothing) + label_smoothing / c
    log_probs = jax.nn.log_softmax(inputs.astype(jnp.float32), axis=-1)
    loss = -jnp.sum(smoothed * log_probs, axis=-1)
    pt = jnp.exp(-loss)
    focal = alpha * (1.0 - pt) ** gamma * loss
    if ignore_index >= 0:
        mask = targets != ignore_index
        tot = jnp.sum(jnp.where(mask, focal, 0.0))
        cnt = jnp.sum(mask)
        return jnp.where(cnt > 0, tot / cnt, tot)
    return jnp.sum(focal) / n


if __name__ == "__main__":
    key = jax.random.PRNGKey(0)
    k_x, k_t = jax.random.split(key)
    N, C = 240, 32
    x = jax.random.normal(k_x, (N, C), dtype=jnp.float32)
    t = jax.random.randint(k_t, (N,), 0, C, dtype=jnp.int32)

    # 1) default path (auto tile size, ignore_index=-100 -> divide by N)
    out1 = jax.block_until_ready(optimized_focal_loss(x, t))
    ref1 = _reference(x, t)
    assert jnp.allclose(out1, ref1, atol=1e-4, rtol=1e-4), (out1, ref1)

    # 2) forced small tile -> multi-step grid with a ragged last block
    out2 = jax.block_until_ready(optimized_focal_loss(x, t, tile_n=64))
    assert jnp.allclose(out2, ref1, atol=1e-4, rtol=1e-4), (out2, ref1)

    # 3) ignore_index >= 0 path (masked rows + valid-row count)
    out3 = jax.block_until_ready(optimized_focal_loss(x, t, ignore_index=3))
    ref3 = _reference(x, t, ignore_index=3)
    assert jnp.allclose(out3, ref3, atol=1e-4, rtol=1e-4), (out3, ref3)

    # 4) bf16 logits path (halved HBM traffic; math still f32 in-kernel)
    xb = x.astype(jnp.bfloat16)
    out4 = jax.block_until_ready(optimized_focal_loss(xb, t))
    ref4 = _reference(xb, t)
    assert jnp.allclose(out4, ref4, atol=1e-3, rtol=1e-3), (out4, ref4)

    print("KERNEL_OK")
</pallas_src>

<mosaic_0001>
module attributes {stable_mosaic.version = 11 : i64} {
  func.func @_row_loss_kernel(%arg0: i32, %arg1: memref<240x32xf32, #tpu.memory_space<vmem>>, %arg2: memref<240x1xi32, #tpu.memory_space<vmem>>, %arg3: memref<240x1xf32, #tpu.memory_space<vmem>>) attributes {dimension_semantics = [#tpu.dimension_semantics<parallel>], iteration_bounds = array<i64: 1>, scalar_prefetch = 0 : i64, scratch_operands = 0 : i64, tpu.core_type = #tpu.core_type<tc>, window_params = [{transform_indices = @transform_0, window_bounds = array<i64: 240, 32>}, {transform_indices = @transform_1, window_bounds = array<i64: 240, 1>}, {transform_indices = @transform_2, window_bounds = array<i64: 240, 1>}]} {
    %c0 = arith.constant 0 : index
    %c0_0 = arith.constant 0 : index
    %0 = vector.load %arg1[%c0, %c0_0] : memref<240x32xf32, #tpu.memory_space<vmem>>, vector<240x32xf32>
    %c0_1 = arith.constant 0 : index
    %c0_2 = arith.constant 0 : index
    %1 = vector.load %arg2[%c0_1, %c0_2] : memref<240x1xi32, #tpu.memory_space<vmem>>, vector<240x1xi32>
    %cst = arith.constant dense<0xFF800000> : vector<240xf32>
    %2 = vector.multi_reduction <maximumf>, %0, %cst [1] : vector<240x32xf32> to vector<240xf32>
    %3 = vector.shape_cast %2 : vector<240xf32> to vector<240x1xf32>
    %4 = vector.broadcast %3 : vector<240x1xf32> to vector<240x32xf32>
    %5 = arith.subf %0, %4 : vector<240x32xf32>
    %6 = math.exp %5 : vector<240x32xf32>
    %cst_3 = arith.constant dense<0.000000e+00> : vector<240xf32>
    %7 = vector.multi_reduction <add>, %6, %cst_3 [1] : vector<240x32xf32> to vector<240xf32>
    %8 = vector.shape_cast %7 : vector<240xf32> to vector<240x1xf32>
    %9 = math.log %8 : vector<240x1xf32>
    %10 = tpu.iota {dimensions = array<i32: 1>} : vector<240x32xi32>
    %11 = vector.broadcast %1 : vector<240x1xi32> to vector<240x32xi32>
    %12 = arith.cmpi eq, %10, %11 : vector<240x32xi32>
    %cst_4 = arith.constant 0.903124988 : f32
    %cst_5 = arith.constant 3.125000e-03 : f32
    %13 = vector.broadcast %cst_4 : f32 to vector<240x32xf32>
    %14 = vector.broadcast %cst_5 : f32 to vector<240x32xf32>
    %15 = arith.select %12, %13, %14 : vector<240x32xi1>, vector<240x32xf32>
    %16 = arith.mulf %15, %5 : vector<240x32xf32>
    %cst_6 = arith.constant dense<0.000000e+00> : vector<240xf32>
    %17 = vector.multi_reduction <add>, %16, %cst_6 [1] : vector<240x32xf32> to vector<240xf32>
    %18 = vector.shape_cast %17 : vector<240xf32> to vector<240x1xf32>
    %19 = arith.subf %9, %18 : vector<240x1xf32>
    %c0_7 = arith.constant 0 : index
    %c0_8 = arith.constant 0 : index
    %20 = vector.load %arg3[%c0_7, %c0_8] : memref<240x1xf32, #tpu.memory_space<vmem>>, vector<240x1xf32>
    tpu.vector_store %arg3[%c0_7, %c0_8], %19 {strides = array<i32>} : memref<240x1xf32, #tpu.memory_space<vmem>>, vector<240x1xf32>,
    return
  }
  func.func @transform_0(%arg0: i32) -> (i32, i32) {
    %c0_i32 = arith.constant 0 : i32
    %c0_i32_0 = arith.constant 0 : i32
    return %arg0, %c0_i32 : i32, i32
  }
  func.func @transform_1(%arg0: i32) -> (i32, i32) {
    %c0_i32 = arith.constant 0 : i32
    %c0_i32_0 = arith.constant 0 : i32
    return %arg0, %c0_i32 : i32, i32
  }
  func.func @transform_2(%arg0: i32) -> (i32, i32) {
    %c0_i32 = arith.constant 0 : i32
    %c0_i32_0 = arith.constant 0 : i32
    return %arg0, %c0_i32 : i32, i32
  }
}

</mosaic_0001>

<bundles_post_ra>
// kernel: tpu_custom_call.1
= control target key start
LH: loop header
LB: loop body
LE: loop exit
PB: predicated region body
PF: predicated region fallthrough
CT: control target
= control target key end

     0   :  { %vm71_vm0 = vcmask 261120   ;;  %v863_v3 = vmov 0   ;;  %s1662_s0 = inlined_call_operand.vmem [shape: f32[240,32], index: 0, kind: input, shape index: {}]   ;;  %s1663_s1 = inlined_call_operand.vmem [shape: s32[240,1], index: 1, kind: input, shape index: {}]   ;;  %s1664_s2 = inlined_call_operand.vmem [shape: f32[240,1], index: 2, kind: output, shape index: {}]  }
   0x1   :  { %v883_v0 = vld [vmem:[%s1662_s0 + $0x10] sm:$0xff]  ;;  %v888_v1 = vld [vmem:[%s1662_s0] sm:$0xff]  ;;  %v893_v2 = vld [vmem:[%s1662_s0 + $0x18] sm:$0xff]  ;;  %742 = vset.pattern.permute.xlu1 %v863_v3  ;;  %741 = vset.pattern.permute.xlu0 %v863_v3 }
   0x2   :  { %v78_v4 = vsel %vm71_vm0, %v883_v0, -inf  ;;  %v72_v5 = vsel %vm71_vm0, %v888_v1, -inf  ;;  %v902_v6 = vld [vmem:[%s1662_s0 + $0x8] sm:$0xff]  ;;  %v81_v7 = vsel %vm71_vm0, %v893_v2, -inf  ;;  %v916_v10 = vld [vmem:[%s1662_s0 + $0x20] sm:$0xff]  ;;  %v925_v13 = vld [vmem:[%s1662_s0 + $0x38] sm:$0xff] }
   0x3   :  { %79 = vmax.xlane.f32.xlu1 %v78_v4  ;;  %73 = vmax.xlane.f32.xlu0 %v72_v5  ;;  %v75_v8 = vsel %vm71_vm0, %v902_v6, -inf  ;;  %v911_v9 = vld [vmem:[%s1662_s0 + $0x28] sm:$0xff]  ;;  %v84_v12 = vsel %vm71_vm0, %v916_v10, -inf  ;;  %v930_v14 = vld [vmem:[%s1662_s0 + $0x30] sm:$0xff]  ;;  %v93_v15 = vsel %vm71_vm0, %v925_v13, -inf  ;;  %v944_v18 = vld [vmem:[%s1662_s0 + $0x40] sm:$0xff] }
   0x4   :  { %v87_v11 = vsel %vm71_vm0, %v911_v9, -inf  ;;  %v90_v16 = vsel %vm71_vm0, %v930_v14, -inf  ;;  %v939_v17 = vld [vmem:[%s1662_s0 + $0x48] sm:$0xff]  ;;  %v96_v20 = vsel %vm71_vm0, %v944_v18, -inf  ;;  %v953_v21 = vld [vmem:[%s1662_s0 + $0x58] sm:$0xff]  ;;  %v958_v22 = vld [vmem:[%s1662_s0 + $0x50] sm:$0xff] }
   0x5   :  { %v99_v19 = vsel %vm71_vm0, %v939_v17, -inf  ;;  %v105_v23 = vsel %vm71_vm0, %v953_v21, -inf  ;;  %v102_v24 = vsel %vm71_vm0, %v958_v22, -inf  ;;  %v967_v25 = vld [vmem:[%s1662_s0 + $0x68] sm:$0xff]  ;;  %v972_v26 = vld [vmem:[%s1662_s0 + $0x60] sm:$0xff]  ;;  %v981_v29 = vld [vmem:[%s1662_s0 + $0x78] sm:$0xff] }
   0x6   :  { %v111_v27 = vsel %vm71_vm0, %v967_v25, -inf  ;;  %v108_v28 = vsel %vm71_vm0, %v972_v26, -inf  ;;  %v986_v30 = vld [vmem:[%s1662_s0 + $0x70] sm:$0xff]  ;;  %v117_v31 = vsel %vm71_vm0, %v981_v29, -inf  ;;  %v995_v33 = vld [vmem:[%s1662_s0 + $0x88] sm:$0xff]  ;;  %v1000_v34 = vld [vmem:[%s1662_s0 + $0x80] sm:$0xff] }
   0x7   :  { %82 = vmax.xlane.f32.xlu1 %v81_v7  ;;  %76 = vmax.xlane.f32.xlu0 %v75_v8  ;;  %v114_v32 = vsel %vm71_vm0, %v986_v30, -inf  ;;  %v123_v35 = vsel %vm71_vm0, %v995_v33, -inf  ;;  %v120_v36 = vsel %vm71_vm0, %v1000_v34, -inf  ;;  %v1009_v37 = vld [vmem:[%s1662_s0 + $0x98] sm:$0xff]  ;;  %v1014_v38 = vld [vmem:[%s1662_s0 + $0x90] sm:$0xff]  ;;  %v1023_v41 = vld [vmem:[%s1662_s0 + $0xa8] sm:$0xff] }
   0x8   :  { %v129_v39 = vsel %vm71_vm0, %v1009_v37, -inf  ;;  %v126_v40 = vsel %vm71_vm0, %v1014_v38, -inf  ;;  %v1028_v42 = vld [vmem:[%s1662_s0 + $0xa0] sm:$0xff]  ;;  %v135_v43 = vsel %vm71_vm0, %v1023_v41, -inf  ;;  %v1037_v45 = vld [vmem:[%s1662_s0 + $0xb8] sm:$0xff]  ;;  %v1042_v46 = vld [vmem:[%s1662_s0 + $0xb0] sm:$0xff] }
   0x9   :  { %v132_v44 = vsel %vm71_vm0, %v1028_v42, -inf  ;;  %v141_v47 = vsel %vm71_vm0, %v1037_v45, -inf  ;;  %v138_v48 = vsel %vm71_vm0, %v1042_v46, -inf  ;;  %v1051_v49 = vld [vmem:[%s1662_s0 + $0xc8] sm:$0xff]  ;;  %v1056_v50 = vld [vmem:[%s1662_s0 + $0xc0] sm:$0xff]  ;;  %v1065_v53 = vld [vmem:[%s1662_s0 + $0xd8] sm:$0xff] }
   0xa   :  { %v147_v51 = vsel %vm71_vm0, %v1051_v49, -inf  ;;  %v144_v52 = vsel %vm71_vm0, %v1056_v50, -inf  ;;  %v1070_v54 = vld [vmem:[%s1662_s0 + $0xd0] sm:$0xff]  ;;  %v153_v55 = vsel %vm71_vm0, %v1065_v53, -inf  ;;  %v1079_v57 = vld [vmem:[%s1662_s0 + $0xe8] sm:$0xff]  ;;  %v1084_v58 = vld [vmem:[%s1662_s0 + $0xe0] sm:$0xff] }
   0xb   :  { %88 = vmax.xlane.f32.xlu1 %v87_v11  ;;  %85 = vmax.xlane.f32.xlu0 %v84_v12  ;;  %v150_v56 = vsel %vm71_vm0, %v1070_v54, -inf  ;;  %v159_v59 = vsel %vm71_vm0, %v1079_v57, -inf  ;;  %v156_v60 = vsel %vm71_vm0, %v1084_v58, -inf  ;;  %v42_v61 = vld [vmem:[%s1663_s1 + $0x8] sm:$0xff]  ;;  %v43_v62 = vld [vmem:[%s1663_s1 + $0x10] sm:$0xff]  ;;  %v41_v63 = vld [vmem:[%s1663_s1] sm:$0xff] }
   0xc   :  { %v44_v3 = vld [vmem:[%s1663_s1 + $0x18] sm:$0xff]  ;;  %v45_v4 = vld [vmem:[%s1663_s1 + $0x20] sm:$0xff]  ;;  %v46_v5 = vld [vmem:[%s1663_s1 + $0x28] sm:$0xff] }
   0xd   :  { %v47_v7 = vld [vmem:[%s1663_s1 + $0x30] sm:$0xff]  ;;  %v48_v8 = vld [vmem:[%s1663_s1 + $0x38] sm:$0xff]  ;;  %v49_v11 = vld [vmem:[%s1663_s1 + $0x40] sm:$0xff] }
   0xf   :  { %94 = vmax.xlane.f32.xlu1 %v93_v15  ;;  %91 = vmax.xlane.f32.xlu0 %v90_v16 }
  0x13   :  { %100 = vmax.xlane.f32.xlu1 %v99_v19  ;;  %97 = vmax.xlane.f32.xlu0 %v96_v20 }
  0x17   :  { %106 = vmax.xlane.f32.xlu1 %v105_v23  ;;  %103 = vmax.xlane.f32.xlu0 %v102_v24 }
  0x1b   :  { %112 = vmax.xlane.f32.xlu1 %v111_v27  ;;  %109 = vmax.xlane.f32.xlu0 %v108_v28 }
  0x1f   :  { %118 = vmax.xlane.f32.xlu1 %v117_v31  ;;  %115 = vmax.xlane.f32.xlu0 %v114_v32 }
  0x23   :  { %124 = vmax.xlane.f32.xlu1 %v123_v35  ;;  %121 = vmax.xlane.f32.xlu0 %v120_v36 }
  0x27   :  { %130 = vmax.xlane.f32.xlu1 %v129_v39  ;;  %127 = vmax.xlane.f32.xlu0 %v126_v40 }
  0x2b   :  { %136 = vmax.xlane.f32.xlu1 %v135_v43  ;;  %133 = vmax.xlane.f32.xlu0 %v132_v44 }
  0x2f   :  { %142 = vmax.xlane.f32.xlu1 %v141_v47  ;;  %139 = vmax.xlane.f32.xlu0 %v138_v48 }
  0x33   :  { %148 = vmax.xlane.f32.xlu1 %v147_v51  ;;  %145 = vmax.xlane.f32.xlu0 %v144_v52 }
  0x37   :  { %154 = vmax.xlane.f32.xlu1 %v153_v55  ;;  %151 = vmax.xlane.f32.xlu0 %v150_v56 }
  0x3b   :  { %160 = vmax.xlane.f32.xlu1 %v159_v59  ;;  %157 = vmax.xlane.f32.xlu0 %v156_v60 }
  0x4c   :  { %408 = vperm.xlu1 %742, %v42_v61  }
  0x50   :  { %411 = vperm.xlu1 %742, %v43_v62  }
  0x51   :  { %405 = vperm.xlu0 %741, %v41_v63  }
  0x54   :  { %414 = vperm.xlu1 %742, %v44_v3  }
  0x58   :  { %417 = vperm.xlu1 %742, %v45_v4  }
  0x5c   :  { %420 = vperm.xlu1 %742, %v46_v5  }
  0x60   :  { %423 = vperm.xlu1 %742, %v47_v7  }
  0x64   :  { %426 = vperm.xlu1 %742, %v48_v8  }
  0x68   :  { %429 = vperm.xlu1 %742, %v49_v11  }
  0x90   :  { %v80_v12 = vpop.xlane.xlu1 %79  ;;  %v74_v15 = vpop.xlane.xlu0 %73 }
  0x91   :  { %v1118_v16 = vsub.f32 %v883_v0, %v80_v12  ;;  %v1121_v19 = vsub.f32 %v888_v1, %v74_v15 }
  0x93   :  { %v196_v20 = vmul.f32 1.442695, %v1118_v16  ;;  %v192_v23 = vmul.f32 1.442695, %v1121_v19 }
  0x94   :  { %v83_v24 = vpop.xlane.xlu1 %82  ;;  %v77_v27 = vpop.xlane.xlu0 %76 }
  0x95   :  { %743 = vpow2.f32 %v196_v20  ;;  %v1126_v28 = vsub.f32 %v893_v2, %v83_v24  ;;  %v1129_v31 = vsub.f32 %v902_v6, %v77_v27 }
  0x96   :  { %745 = vpow2.f32 %v192_v23 }
  0x97   :  { %v198_v0 = vmul.f32 1.442695, %v1126_v28  ;;  %v194_v32 = vmul.f32 1.442695, %v1129_v31 }
  0x98   :  { %v89_v1 = vpop.xlane.xlu1 %88  ;;  %v86_v35 = vpop.xlane.xlu0 %85 }
  0x99   :  { %747 = vpow2.f32 %v198_v0  ;;  %v1134_v36 = vsub.f32 %v911_v9, %v89_v1  ;;  %v1137_v39 = vsub.f32 %v916_v10, %v86_v35 }
  0x9a   :  { %749 = vpow2.f32 %v194_v32 }
  0x9b   :  { %v202_v2 = vmul.f32 1.442695, %v1134_v36  ;;  %v200_v6 = vmul.f32 1.442695, %v1137_v39 }
  0x9c   :  { %v95_v40 = vpop.xlane.xlu1 %94  ;;  %v92_v43 = vpop.xlane.xlu0 %91 }
  0x9d   :  { %751 = vpow2.f32 %v202_v2  ;;  %v1142_v44 = vsub.f32 %v925_v13, %v95_v40  ;;  %v1145_v47 = vsub.f32 %v930_v14, %v92_v43 }
  0x9e   :  { %753 = vpow2.f32 %v200_v6 }
  0x9f   :  { %v744_v9 = vpop.eup %743  ;;  %v206_v48 = vmul.f32 1.442695, %v1142_v44  ;;  %v204_v10 = vmul.f32 1.442695, %v1145_v47 }
  0xa0   :  { %v746_v51 = vpop.eup %745  ;;  %v101_v52 = vpop.xlane.xlu1 %100  ;;  %v258_v62 = vsel %vm71_vm0, %v744_v9, 0.0 }
  0xa1   :  { %v98_v55 = vpop.xlane.xlu0 %97  ;;  %755 = vpow2.f32 %v206_v48  ;;  %v1150_v56 = vsub.f32 %v939_v17, %v101_v52  ;;  %v252_v13 = vsel %vm71_vm0, %v746_v51, 0.0 }
  0xa2   :  { %v1153_v59 = vsub.f32 %v944_v18, %v98_v55  ;;  %757 = vpow2.f32 %v204_v10  ;;  %253 = vadd.xlane.f32.xlu0 %v252_v13 }
  0xa3   :  { %v748_v14 = vpop.eup %747  ;;  %v210_v60 = vmul.f32 1.442695, %v1150_v56 }
  0xa4   :  { %v208_v61 = vmul.f32 1.442695, %v1153_v59  ;;  %v750_v63 = vpop.eup %749  ;;  %v107_v3 = vpop.xlane.xlu1 %106  ;;  %v261_v12 = vsel %vm71_vm0, %v748_v14, 0.0 }
  0xa5   :  { %v104_v4 = vpop.xlane.xlu0 %103  ;;  %759 = vpow2.f32 %v210_v60  ;;  %v1160_v17 = vsub.f32 %v953_v21, %v107_v3  ;;  %v255_v5 = vsel %vm71_vm0, %v750_v63, 0.0 }
  0xa6   :  { %v1163_v18 = vsub.f32 %v958_v22, %v104_v4  ;;  %761 = vpow2.f32 %v208_v61  ;;  %259 = vadd.xlane.f32.xlu0 %v258_v62  ;;  %256 = vadd.xlane.f32.xlu1 %v255_v5 }
  0xa7   :  { %v752_v7 = vpop.eup %751  ;;  %v214_v8 = vmul.f32 1.442695, %v1160_v17 }
  0xa8   :  { %v212_v11 = vmul.f32 1.442695, %v1163_v18  ;;  %v754_v15 = vpop.eup %753  ;;  %v113_v20 = vpop.xlane.xlu1 %112  ;;  %v267_v1 = vsel %vm71_vm0, %v752_v7, 0.0 }
  0xa9   :  { %v110_v23 = vpop.xlane.xlu0 %109  ;;  %763 = vpow2.f32 %v214_v8  ;;  %v1170_v21 = vsub.f32 %v967_v25, %v113_v20  ;;  %v264_v24 = vsel %vm71_vm0, %v754_v15, 0.0 }
  0xaa   :  { %v1173_v22 = vsub.f32 %v972_v26, %v110_v23  ;;  %765 = vpow2.f32 %v212_v11  ;;  %262 = vadd.xlane.f32.xlu1 %v261_v12  ;;  %265 = vadd.xlane.f32.xlu0 %v264_v24 }
  0xab   :  { %v756_v27 = vpop.eup %755  ;;  %v218_v0 = vmul.f32 1.442695, %v1170_v21 }
  0xac   :  { %v216_v32 = vmul.f32 1.442695, %v1173_v22  ;;  %v758_v35 = vpop.eup %757  ;;  %v119_v2 = vpop.xlane.xlu1 %118  ;;  %v273_v10 = vsel %vm71_vm0, %v756_v27, 0.0 }
  0xad   :  { %v116_v6 = vpop.xlane.xlu0 %115  ;;  %767 = vpow2.f32 %v218_v0  ;;  %v1180_v25 = vsub.f32 %v981_v29, %v119_v2  ;;  %v270_v40 = vsel %vm71_vm0, %v758_v35, 0.0 }
  0xae   :  { %v1183_v26 = vsub.f32 %v986_v30, %v116_v6  ;;  %769 = vpow2.f32 %v216_v32  ;;  %268 = vadd.xlane.f32.xlu1 %v267_v1  ;;  %271 = vadd.xlane.f32.xlu0 %v270_v40 }
  0xaf   :  { %v760_v43 = vpop.eup %759  ;;  %v222_v9 = vmul.f32 1.442695, %v1180_v25 }
  0xb0   :  { %v220_v48 = vmul.f32 1.442695, %v1183_v26  ;;  %v762_v51 = vpop.eup %761  ;;  %v125_v52 = vpop.xlane.xlu1 %124  ;;  %v279_v62 = vsel %vm71_vm0, %v760_v43, 0.0 }
  0xb1   :  { %v122_v55 = vpop.xlane.xlu0 %121  ;;  %771 = vpow2.f32 %v222_v9  ;;  %v1190_v29 = vsub.f32 %v995_v33, %v125_v52  ;;  %v276_v13 = vsel %vm71_vm0, %v762_v51, 0.0 }
  0xb2   :  { %v1193_v30 = vsub.f32 %v1000_v34, %v122_v55  ;;  %773 = vpow2.f32 %v220_v48  ;;  %274 = vadd.xlane.f32.xlu1 %v273_v10  ;;  %277 = vadd.xlane.f32.xlu0 %v276_v13 }
  0xb3   :  { %v764_v14 = vpop.eup %763  ;;  %v226_v60 = vmul.f32 1.442695, %v1190_v29 }
  0xb4   :  { %v224_v61 = vmul.f32 1.442695, %v1193_v30  ;;  %v766_v63 = vpop.eup %765  ;;  %v131_v3 = vpop.xlane.xlu1 %130  ;;  %v285_v12 = vsel %vm71_vm0, %v764_v14, 0.0 }
  0xb5   :  { %v128_v4 = vpop.xlane.xlu0 %127  ;;  %775 = vpow2.f32 %v226_v60  ;;  %v1200_v33 = vsub.f32 %v1009_v37, %v131_v3  ;;  %v282_v5 = vsel %vm71_vm0, %v766_v63, 0.0 }
  0xb6   :  { %v1203_v34 = vsub.f32 %v1014_v38, %v128_v4  ;;  %777 = vpow2.f32 %v224_v61  ;;  %280 = vadd.xlane.f32.xlu1 %v279_v62  ;;  %283 = vadd.xlane.f32.xlu0 %v282_v5 }
  0xb7   :  { %v768_v7 = vpop.eup %767  ;;  %v230_v8 = vmul.f32 1.442695, %v1200_v33 }
  0xb8   :  { %v228_v11 = vmul.f32 1.442695, %v1203_v34  ;;  %v770_v15 = vpop.eup %769  ;;  %v137_v20 = vpop.xlane.xlu1 %136  ;;  %v291_v1 = vsel %vm71_vm0, %v768_v7, 0.0 }
  0xb9   :  { %v134_v23 = vpop.xlane.xlu0 %133  ;;  %779 = vpow2.f32 %v230_v8  ;;  %v1210_v37 = vsub.f32 %v1023_v41, %v137_v20  ;;  %v288_v24 = vsel %vm71_vm0, %v770_v15, 0.0 }
  0xba   :  { %v1213_v38 = vsub.f32 %v1028_v42, %v134_v23  ;;  %781 = vpow2.f32 %v228_v11  ;;  %286 = vadd.xlane.f32.xlu1 %v285_v12  ;;  %289 = vadd.xlane.f32.xlu0 %v288_v24 }
  0xbb   :  { %v772_v27 = vpop.eup %771  ;;  %v234_v0 = vmul.f32 1.442695, %v1210_v37 }
  0xbc   :  { %v232_v32 = vmul.f32 1.442695, %v1213_v38  ;;  %v774_v35 = vpop.eup %773  ;;  %v143_v2 = vpop.xlane.xlu1 %142  ;;  %v297_v10 = vsel %vm71_vm0, %v772_v27, 0.0 }
  0xbd   :  { %v140_v6 = vpop.xlane.xlu0 %139  ;;  %783 = vpow2.f32 %v234_v0  ;;  %v1220_v41 = vsub.f32 %v1037_v45, %v143_v2  ;;  %v294_v40 = vsel %vm71_vm0, %v774_v35, 0.0 }
  0xbe   :  { %v1223_v42 = vsub.f32 %v1042_v46, %v140_v6  ;;  %785 = vpow2.f32 %v232_v32  ;;  %292 = vadd.xlane.f32.xlu1 %v291_v1  ;;  %295 = vadd.xlane.f32.xlu0 %v294_v40 }
  0xbf   :  { %v776_v43 = vpop.eup %775  ;;  %v238_v9 = vmul.f32 1.442695, %v1220_v41 }
  0xc0   :  { %v236_v48 = vmul.f32 1.442695, %v1223_v42  ;;  %v778_v51 = vpop.eup %777  ;;  %v149_v52 = vpop.xlane.xlu1 %148  ;;  %v303_v62 = vsel %vm71_vm0, %v776_v43, 0.0 }
  0xc1   :  { %v146_v55 = vpop.xlane.xlu0 %145  ;;  %787 = vpow2.f32 %v238_v9  ;;  %v1230_v45 = vsub.f32 %v1051_v49, %v149_v52  ;;  %v300_v13 = vsel %vm71_vm0, %v778_v51, 0.0 }
  0xc2   :  { %v1233_v46 = vsub.f32 %v1056_v50, %v146_v55  ;;  %789 = vpow2.f32 %v236_v48  ;;  %298 = vadd.xlane.f32.xlu1 %v297_v10  ;;  %301 = vadd.xlane.f32.xlu0 %v300_v13 }
  0xc3   :  { %v780_v14 = vpop.eup %779  ;;  %v242_v60 = vmul.f32 1.442695, %v1230_v45 }
  0xc4   :  { %v240_v61 = vmul.f32 1.442695, %v1233_v46  ;;  %v782_v63 = vpop.eup %781  ;;  %v155_v3 = vpop.xlane.xlu1 %154  ;;  %v309_v12 = vsel %vm71_vm0, %v780_v14, 0.0 }
  0xc5   :  { %v152_v4 = vpop.xlane.xlu0 %151  ;;  %791 = vpow2.f32 %v242_v60  ;;  %v1240_v49 = vsub.f32 %v1065_v53, %v155_v3  ;;  %v306_v5 = vsel %vm71_vm0, %v782_v63, 0.0  ;;  %v51_v60 = vld [vmem:[%s1663_s1 + $0x50] sm:$0xff]  ;;  %v52_v63 = vld [vmem:[%s1663_s1 + $0x58] sm:$0xff] }
  0xc6   :  { %v1243_v50 = vsub.f32 %v1070_v54, %v152_v4  ;;  %793 = vpow2.f32 %v240_v61  ;;  %304 = vadd.xlane.f32.xlu1 %v303_v62  ;;  %307 = vadd.xlane.f32.xlu0 %v306_v5  ;;  %v50_v61 = vld [vmem:[%s1663_s1 + $0x48] sm:$0xff]  ;;  %v53_v62 = vld [vmem:[%s1663_s1 + $0x60] sm:$0xff]  ;;  %v55_v3 = vld [vmem:[%s1663_s1 + $0x70] sm:$0xff] }
  0xc7   :  { %v784_v7 = vpop.eup %783  ;;  %v246_v8 = vmul.f32 1.442695, %v1240_v49  ;;  %v54_v4 = vld [vmem:[%s1663_s1 + $0x68] sm:$0xff]  ;;  %v57_v5 = vld [vmem:[%s1663_s1 + $0x80] sm:$0xff] }
  0xc8   :  { %v244_v11 = vmul.f32 1.442695, %v1243_v50  ;;  %v786_v15 = vpop.eup %785  ;;  %v161_v20 = vpop.xlane.xlu1 %160  ;;  %v315_v1 = vsel %vm71_vm0, %v784_v7, 0.0  ;;  %v56_v7 = vld [vmem:[%s1663_s1 + $0x78] sm:$0xff] }
  0xc9   :  { %v158_v23 = vpop.xlane.xlu0 %157  ;;  %795 = vpow2.f32 %v246_v8  ;;  %v1250_v53 = vsub.f32 %v1079_v57, %v161_v20  ;;  %v312_v24 = vsel %vm71_vm0, %v786_v15, 0.0  ;;  %v59_v8 = vld [vmem:[%s1663_s1 + $0x90] sm:$0xff]  ;;  %v60_v15 = vld [vmem:[%s1663_s1 + $0x98] sm:$0xff] }
  0xca   :  { %v1253_v54 = vsub.f32 %v1084_v58, %v158_v23  ;;  %797 = vpow2.f32 %v244_v11  ;;  %310 = vadd.xlane.f32.xlu1 %v309_v12  ;;  %313 = vadd.xlane.f32.xlu0 %v312_v24  ;;  %v58_v11 = vld [vmem:[%s1663_s1 + $0x88] sm:$0xff]  ;;  %v61_v12 = vld [vmem:[%s1663_s1 + $0xa0] sm:$0xff]  ;;  %v63_v20 = vld [vmem:[%s1663_s1 + $0xb0] sm:$0xff] }
  0xcb   :  { %v788_v27 = vpop.eup %787  ;;  %v250_v0 = vmul.f32 1.442695, %v1250_v53  ;;  %v62_v24 = vld [vmem:[%s1663_s1 + $0xa8] sm:$0xff] }
  0xcc   :  { %v248_v32 = vmul.f32 1.442695, %v1253_v54  ;;  %v790_v35 = vpop.eup %789  ;;  %v321_v2 = vsel %vm71_vm0, %v788_v27, 0.0  ;;  %v409_v23 = vpop.permute.xlu1 %408  ;;  %v65_v27 = vld [vmem:[%s1663_s1 + $0xc0] sm:$0xff] }
  0xcd   :  { %799 = vpow2.f32 %v250_v0  ;;  %v318_v57 = vsel %vm71_vm0, %v790_v35, 0.0  ;;  %v64_v0 = vld [vmem:[%s1663_s1 + $0xb8] sm:$0xff]  ;;  %v66_v35 = vld [vmem:[%s1663_s1 + $0xc8] sm:$0xff] }
  0xce   :  { %801 = vpow2.f32 %v248_v32  ;;  %316 = vadd.xlane.f32.xlu1 %v315_v1  ;;  %319 = vadd.xlane.f32.xlu0 %v318_v57  ;;  %v67_v1 = vld [vmem:[%s1663_s1 + $0xd0] sm:$0xff]  ;;  %v69_v57 = vld [vmem:[%s1663_s1 + $0xe0] sm:$0xff] }
  0xcf   :  { %v792_v58 = vpop.eup %791 }
  0xd0   :  { %v794_v6 = vpop.eup %793  ;;  %v327_v9 = vsel %vm71_vm0, %v792_v58, 0.0  ;;  %v412_v32 = vpop.permute.xlu1 %411 }
  0xd1   :  { %v324_v40 = vsel %vm71_vm0, %v794_v6, 0.0  ;;  %v70_v6 = vld [vmem:[%s1663_s1 + $0xe8] sm:$0xff] }
  0xd2   :  { %322 = vadd.xlane.f32.xlu1 %v321_v2  ;;  %325 = vadd.xlane.f32.xlu0 %v324_v40  ;;  %v68_v2 = vld [vmem:[%s1663_s1 + $0xd8] sm:$0xff] }
  0xd3   :  { %v796_v43 = vpop.eup %795 }
  0xd4   :  { %v798_v48 = vpop.eup %797  ;;  %v333_v52 = vsel %vm71_vm0, %v796_v43, 0.0  ;;  %v415_v58 = vpop.permute.xlu1 %414 }
  0xd5   :  { %v330_v10 = vsel %vm71_vm0, %v798_v48, 0.0  ;;  %v402_v48 = vlaneseq }
  0xd6   :  { %328 = vadd.xlane.f32.xlu1 %v327_v9  ;;  %331 = vadd.xlane.f32.xlu0 %v330_v10 }
  0xd7   :  { %v800_v51 = vpop.eup %799  ;;  %v1330_v10 = vand.u32 127, %v402_v48 }
  0xd8   :  { %v802_v55 = vpop.eup %801  ;;  %v339_v14 = vsel %vm71_vm0, %v800_v51, 0.0  ;;  %v418_v40 = vpop.permute.xlu1 %417 }
  0xd9   :  { %v336_v13 = vsel %vm71_vm0, %v802_v55, 0.0  ;;  %v406_v51 = vpop.permute.xlu0 %405  ;;  %vm495_vm1 = vcmp.eq.s32.totalorder %v1330_v10, %v409_v23  ;;  %v864_v55 = vmov 0.003125   ;;  %vm496_vm3 = vcmp.eq.s32.totalorder %v1330_v10, %v412_v32 }
  0xda   :  { %334 = vadd.xlane.f32.xlu1 %v333_v52  ;;  %337 = vadd.xlane.f32.xlu0 %v336_v13  ;;  %vm494_vm2 = vcmp.eq.s32.totalorder %v1330_v10, %v406_v51  ;;  %v525_v13 = vsel %vm495_vm1, 0.903125, %v864_v55  ;;  %vm497_vm4 = vcmp.eq.s32.totalorder %v1330_v10, %v415_v58  ;;  %vm498_vm5 = vcmp.eq.s32.totalorder %v1330_v10, %v418_v40 }
  0xdc   :  { %v421_v43 = vpop.permute.xlu1 %420 }
  0xdd   :  { %vm499_vm6 = vcmp.eq.s32.totalorder %v1330_v10, %v421_v43 }
  0xde   :  { %340 = vadd.xlane.f32.xlu1 %v339_v14  ;;  %v524_v14 = vsel %vm494_vm2, 0.903125, %v864_v55 }
  0xe0   :  { %v424_v9 = vpop.permute.xlu1 %423 }
  0xe1   :  { %vm500_vm7 = vcmp.eq.s32.totalorder %v1330_v10, %v424_v9 }
  0xe4   :  { %v427_v52 = vpop.permute.xlu1 %426 }
  0xe5   :  { %vm501_vm8 = vcmp.eq.s32.totalorder %v1330_v10, %v427_v52 }
  0xe6   :  { %v531_v32 = vsel %vm501_vm8, 0.903125, %v864_v55 }
  0xef   :  { %435 = vperm.xlu1 %742, %v51_v60   ;;  %v430_v60 = vpop.permute.xlu1 %429 }
  0xf0   :  { %432 = vperm.xlu0 %741, %v50_v61   ;;  %vm502_vm9 = vcmp.eq.s32.totalorder %v1330_v10, %v430_v60 }
  0xf3   :  { %441 = vperm.xlu1 %742, %v53_v62   ;;  %v555_v62 = vmul.f32 %v525_v13, %v1129_v31 }
  0xf4   :  { %438 = vperm.xlu0 %741, %v52_v63   ;;  %v554_v63 = vmul.f32 %v524_v14, %v1121_v19 }
  0xf6   :  { %v584_v31 = vsel %vm71_vm0, %v554_v63, 0.0 }
  0xf7   :  { %447 = vperm.xlu1 %742, %v55_v3   ;;  %v526_v3 = vsel %vm496_vm3, 0.903125, %v864_v55 }
  0xf8   :  { %444 = vperm.xlu0 %741, %v54_v4   ;;  %v527_v4 = vsel %vm497_vm4, 0.903125, %v864_v55  ;;  %v556_v19 = vmul.f32 %v526_v3, %v1118_v16 }
  0xfb   :  { %453 = vperm.xlu1 %742, %v57_v5  }
  0xfc   :  { %450 = vperm.xlu0 %741, %v56_v7  }
  0xff   :  { %459 = vperm.xlu1 %742, %v59_v8   ;;  %v557_v8 = vmul.f32 %v527_v4, %v1126_v28 }
 0x100   :  { %456 = vperm.xlu0 %741, %v58_v11   ;;  %v587_v11 = vsel %vm71_vm0, %v555_v62, 0.0 }
 0x101   :  { %v593_v16 = vsel %vm71_vm0, %v557_v8, 0.0 }
 0x103   :  { %465 = vperm.xlu1 %742, %v61_v12   ;;  %v528_v12 = vsel %vm498_vm5, 0.903125, %v864_v55 }
 0x104   :  { %462 = vperm.xlu0 %741, %v60_v15   ;;  %v529_v15 = vsel %vm499_vm6, 0.903125, %v864_v55 }
 0x105   :  { %v559_v28 = vmul.f32 %v529_v15, %v1134_v36  ;;  %v561_v36 = vmul.f32 %v531_v32, %v1142_v44 }
 0x107   :  { %471 = vperm.xlu1 %742, %v63_v20   ;;  %v599_v58 = vsel %vm71_vm0, %v559_v28, 0.0  ;;  %v605_v9 = vsel %vm71_vm0, %v561_v36, 0.0 }
 0x108   :  { %468 = vperm.xlu0 %741, %v62_v24   ;;  %v590_v24 = vsel %vm71_vm0, %v556_v19, 0.0 }
 0x10b   :  { %477 = vperm.xlu1 %742, %v65_v27   ;;  %v558_v27 = vmul.f32 %v528_v12, %v1137_v39 }
 0x10c   :  { %474 = vperm.xlu0 %741, %v64_v0   ;;  %v530_v0 = vsel %vm500_vm7, 0.903125, %v864_v55 }
 0x10d   :  { %v560_v39 = vmul.f32 %v530_v0, %v1145_v47 }
 0x10f   :  { %483 = vperm.xlu1 %742, %v67_v1   ;;  %v602_v43 = vsel %vm71_vm0, %v560_v39, 0.0 }
 0x110   :  { %480 = vperm.xlu0 %741, %v66_v35  }
 0x113   :  { %489 = vperm.xlu1 %742, %v69_v57   ;;  %v596_v57 = vsel %vm71_vm0, %v558_v27, 0.0 }
 0x114   :  { %486 = vperm.xlu0 %741, %v68_v2   ;;  %v532_v2 = vsel %vm502_vm9, 0.903125, %v864_v55 }
 0x115   :  { %v562_v44 = vmul.f32 %v532_v2, %v1153_v59 }
 0x117   :  { %v608_v47 = vsel %vm71_vm0, %v562_v44, 0.0 }
 0x118   :  { %492 = vperm.xlu0 %741, %v70_v6  }
 0x12f   :  { %v1336_v61 = vpop.xlane.xlu0 %253 }
 0x130   :  { %803 = vlog2.f32 %v1336_v61 }
 0x133   :  { %v1344_v5 = vpop.xlane.xlu1 %256  ;;  %v1346_v7 = vpop.xlane.xlu0 %259 }
 0x134   :  { %805 = vlog2.f32 %v1344_v5 }
 0x135   :  { %807 = vlog2.f32 %v1346_v7 }
 0x137   :  { %v1356_v20 = vpop.xlane.xlu1 %262  ;;  %588 = vadd.xlane.f32.xlu0 %v587_v11  ;;  %585 = vadd.xlane.f32.xlu1 %v584_v31  ;;  %v1358_v23 = vpop.xlane.xlu0 %265 }
 0x138   :  { %809 = vlog2.f32 %v1356_v20 }
 0x139   :  { %811 = vlog2.f32 %v1358_v23 }
 0x13b   :  { %v1368_v1 = vpop.xlane.xlu1 %268  ;;  %591 = vadd.xlane.f32.xlu0 %v590_v24  ;;  %594 = vadd.xlane.f32.xlu1 %v593_v16  ;;  %v1370_v35 = vpop.xlane.xlu0 %271 }
 0x13c   :  { %813 = vlog2.f32 %v1368_v1 }
 0x13d   :  { %815 = vlog2.f32 %v1370_v35 }
 0x13f   :  { %v1378_v6 = vpop.xlane.xlu1 %274  ;;  %597 = vadd.xlane.f32.xlu0 %v596_v57  ;;  %600 = vadd.xlane.f32.xlu1 %v599_v58  ;;  %v1380_v40 = vpop.xlane.xlu0 %277 }
 0x140   :  { %817 = vlog2.f32 %v1378_v6 }
 0x141   :  { %819 = vlog2.f32 %v1380_v40 }
 0x143   :  { %v1385_v48 = vpop.xlane.xlu1 %280  ;;  %603 = vadd.xlane.f32.xlu0 %v602_v43  ;;  %606 = vadd.xlane.f32.xlu1 %v605_v9  ;;  %v1387_v51 = vpop.xlane.xlu0 %283 }
 0x144   :  { %821 = vlog2.f32 %v1385_v48 }
 0x145   :  { %823 = vlog2.f32 %v1387_v51 }
 0x147   :  { %v1390_v52 = vpop.xlane.xlu1 %286  ;;  %609 = vadd.xlane.f32.xlu0 %v608_v47  ;;  %v1392_v13 = vpop.xlane.xlu0 %289 }
 0x148   :  { %825 = vlog2.f32 %v1390_v52 }
 0x149   :  { %827 = vlog2.f32 %v1392_v13 }
 0x14b   :  { %v1394_v14 = vpop.xlane.xlu1 %292  ;;  %v1396_v60 = vpop.xlane.xlu0 %295 }
 0x14c   :  { %829 = vlog2.f32 %v1394_v14 }
 0x14d   :  { %831 = vlog2.f32 %v1396_v60 }
 0x14f   :  { %v1398_v62 = vpop.xlane.xlu1 %298  ;;  %v1400_v59 = vpop.xlane.xlu0 %301 }
 0x150   :  { %833 = vlog2.f32 %v1398_v62 }
 0x153   :  { %v1402_v63 = vpop.xlane.xlu1 %304  ;;  %v1404_v3 = vpop.xlane.xlu0 %307 }
 0x157   :  { %v1406_v4 = vpop.xlane.xlu1 %310  ;;  %v1408_v8 = vpop.xlane.xlu0 %313 }
 0x15b   :  { %v1410_v11 = vpop.xlane.xlu1 %316  ;;  %v1412_v31 = vpop.xlane.xlu0 %319 }
 0x15f   :  { %v1414_v19 = vpop.xlane.xlu1 %322  ;;  %v1416_v12 = vpop.xlane.xlu0 %325 }
 0x163   :  { %v1418_v15 = vpop.xlane.xlu1 %328  ;;  %v1420_v28 = vpop.xlane.xlu0 %331 }
 0x167   :  { %v1422_v24 = vpop.xlane.xlu1 %334  ;;  %v1424_v16 = vpop.xlane.xlu0 %337 }
 0x16b   :  { %v1426_v27 = vpop.xlane.xlu1 %340 }
 0x16f   :  { %v436_v0 = vpop.permute.xlu1 %435  ;;  %v433_v32 = vpop.permute.xlu0 %432 }
 0x170   :  { %vm504_vm10 = vcmp.eq.s32.totalorder %v1330_v10, %v436_v0  ;;  %vm503_vm11 = vcmp.eq.s32.totalorder %v1330_v10, %v433_v32 }
 0x171   :  { %v534_v36 = vsel %vm504_vm10, 0.903125, %v864_v55  ;;  %v533_v57 = vsel %vm503_vm11, 0.903125, %v864_v55 }
 0x172   :  { %v563_v58 = vmul.f32 %v533_v57, %v1150_v56  ;;  %v564_v39 = vmul.f32 %v534_v36, %v1163_v18 }
 0x173   :  { %v442_v2 = vpop.permute.xlu1 %441  ;;  %v439_v43 = vpop.permute.xlu0 %438 }
 0x174   :  { %vm506_vm12 = vcmp.eq.s32.totalorder %v1330_v10, %v442_v2  ;;  %vm505_vm13 = vcmp.eq.s32.totalorder %v1330_v10, %v439_v43  ;;  %v614_v9 = vsel %vm71_vm0, %v564_v39, 0.0  ;;  %v611_v44 = vsel %vm71_vm0, %v563_v58, 0.0 }
 0x175   :  { %v536_v47 = vsel %vm506_vm12, 0.903125, %v864_v55  ;;  %v535_v0 = vsel %vm505_vm13, 0.903125, %v864_v55  ;;  %615 = vadd.xlane.f32.xlu0 %v614_v9  ;;  %612 = vadd.xlane.f32.xlu1 %v611_v44 }
 0x176   :  { %v565_v56 = vmul.f32 %v535_v0, %v1160_v17  ;;  %v566_v18 = vmul.f32 %v536_v47, %v1173_v22 }
 0x177   :  { %v448_v32 = vpop.permute.xlu1 %447  ;;  %v445_v36 = vpop.permute.xlu0 %444 }
 0x178   :  { %vm508_vm14 = vcmp.eq.s32.totalorder %v1330_v10, %v448_v32  ;;  %vm507_vm15 = vcmp.eq.s32.totalorder %v1330_v10, %v445_v36  ;;  %v620_v57 = vsel %vm71_vm0, %v566_v18, 0.0  ;;  %v617_v58 = vsel %vm71_vm0, %v565_v56, 0.0 }
 0x179   :  { %v538_v39 = vsel %vm508_vm14, 0.903125, %v864_v55  ;;  %v537_v2 = vsel %vm507_vm15, 0.903125, %v864_v55  ;;  %621 = vadd.xlane.f32.xlu0 %v620_v57  ;;  %618 = vadd.xlane.f32.xlu1 %v617_v58 }
 0x17a   :  { %v568_v17 = vmul.f32 %v538_v39, %v1183_v26  ;;  %v567_v22 = vmul.f32 %v537_v2, %v1170_v21 }
 0x17b   :  { %v454_v43 = vpop.permute.xlu1 %453  ;;  %v451_v9 = vpop.permute.xlu0 %450 }
 0x17c   :  { %vm510_vm1 = vcmp.eq.s32.totalorder %v1330_v10, %v454_v43  ;;  %vm509_vm2 = vcmp.eq.s32.totalorder %v1330_v10, %v451_v9  ;;  %v626_v44 = vsel %vm71_vm0, %v568_v17, 0.0  ;;  %v623_v47 = vsel %vm71_vm0, %v567_v22, 0.0 }
 0x17d   :  { %v540_v0 = vsel %vm510_vm1, 0.903125, %v864_v55  ;;  %v539_v56 = vsel %vm509_vm2, 0.903125, %v864_v55  ;;  %627 = vadd.xlane.f32.xlu0 %v626_v44  ;;  %624 = vadd.xlane.f32.xlu1 %v623_v47 }
 0x17e   :  { %v570_v26 = vmul.f32 %v540_v0, %v1193_v30  ;;  %v569_v21 = vmul.f32 %v539_v56, %v1180_v25 }
 0x17f   :  { %v460_v18 = vpop.permute.xlu1 %459  ;;  %v457_v32 = vpop.permute.xlu0 %456 }
 0x180   :  { %vm512_vm3 = vcmp.eq.s32.totalorder %v1330_v10, %v460_v18  ;;  %vm511_vm4 = vcmp.eq.s32.totalorder %v1330_v10, %v457_v32  ;;  %v632_v36 = vsel %vm71_vm0, %v570_v26, 0.0  ;;  %v629_v57 = vsel %vm71_vm0, %v569_v21, 0.0 }
 0x181   :  { %v542_v58 = vsel %vm512_vm3, 0.903125, %v864_v55  ;;  %v541_v39 = vsel %vm511_vm4, 0.903125, %v864_v55  ;;  %633 = vadd.xlane.f32.xlu0 %v632_v36  ;;  %630 = vadd.xlane.f32.xlu1 %v629_v57 }
 0x182   :  { %v572_v30 = vmul.f32 %v542_v58, %v1203_v34  ;;  %v571_v25 = vmul.f32 %v541_v39, %v1190_v29 }
 0x183   :  { %v466_v2 = vpop.permute.xlu1 %465  ;;  %v463_v17 = vpop.permute.xlu0 %462 }
 0x184   :  { %vm514_vm5 = vcmp.eq.s32.totalorder %v1330_v10, %v466_v2  ;;  %vm513_vm6 = vcmp.eq.s32.totalorder %v1330_v10, %v463_v17  ;;  %v638_v22 = vsel %vm71_vm0, %v572_v30, 0.0  ;;  %v635_v43 = vsel %vm71_vm0, %v571_v25, 0.0 }
 0x185   :  { %v544_v9 = vsel %vm514_vm5, 0.903125, %v864_v55  ;;  %v543_v44 = vsel %vm513_vm6, 0.903125, %v864_v55  ;;  %639 = vadd.xlane.f32.xlu0 %v638_v22  ;;  %636 = vadd.xlane.f32.xlu1 %v635_v43 }
 0x186   :  { %v574_v34 = vmul.f32 %v544_v9, %v1213_v38  ;;  %v573_v29 = vmul.f32 %v543_v44, %v1200_v33 }
 0x187   :  { %v472_v47 = vpop.permute.xlu1 %471  ;;  %v469_v0 = vpop.permute.xlu0 %468 }
 0x188   :  { %vm516_vm7 = vcmp.eq.s32.totalorder %v1330_v10, %v472_v47  ;;  %vm515_vm8 = vcmp.eq.s32.totalorder %v1330_v10, %v469_v0  ;;  %v644_v56 = vsel %vm71_vm0, %v574_v34, 0.0  ;;  %v641_v26 = vsel %vm71_vm0, %v573_v29, 0.0 }
 0x189   :  { %v546_v21 = vsel %vm516_vm7, 0.903125, %v864_v55  ;;  %v545_v18 = vsel %vm515_vm8, 0.903125, %v864_v55  ;;  %645 = vadd.xlane.f32.xlu0 %v644_v56  ;;  %642 = vadd.xlane.f32.xlu1 %v641_v26 }
 0x18a   :  { %v576_v38 = vmul.f32 %v546_v21, %v1223_v42  ;;  %v575_v33 = vmul.f32 %v545_v18, %v1210_v37 }
 0x18b   :  { %v478_v32 = vpop.permute.xlu1 %477  ;;  %v475_v36 = vpop.permute.xlu0 %474 }
 0x18c   :  { %vm518_vm9 = vcmp.eq.s32.totalorder %v1330_v10, %v478_v32  ;;  %vm517_vm10 = vcmp.eq.s32.totalorder %v1330_v10, %v475_v36  ;;  %v650_v57 = vsel %vm71_vm0, %v576_v38, 0.0  ;;  %v647_v58 = vsel %vm71_vm0, %v575_v33, 0.0 }
 0x18d   :  { %v548_v39 = vsel %vm518_vm9, 0.903125, %v864_v55  ;;  %v547_v30 = vsel %vm517_vm10, 0.903125, %v864_v55  ;;  %651 = vadd.xlane.f32.xlu0 %v650_v57  ;;  %648 = vadd.xlane.f32.xlu1 %v647_v58 }
 0x18e   :  { %v578_v42 = vmul.f32 %v548_v39, %v1233_v46  ;;  %v577_v37 = vmul.f32 %v547_v30, %v1220_v41 }
 0x18f   :  { %v484_v25 = vpop.permute.xlu1 %483  ;;  %v481_v2 = vpop.permute.xlu0 %480 }
 0x190   :  { %vm520_vm11 = vcmp.eq.s32.totalorder %v1330_v10, %v484_v25  ;;  %vm519_vm12 = vcmp.eq.s32.totalorder %v1330_v10, %v481_v2  ;;  %v656_v17 = vsel %vm71_vm0, %v578_v42, 0.0  ;;  %v653_v22 = vsel %vm71_vm0, %v577_v37, 0.0 }
 0x191   :  { %v550_v43 = vsel %vm520_vm11, 0.903125, %v864_v55  ;;  %v549_v9 = vsel %vm519_vm12, 0.903125, %v864_v55  ;;  %657 = vadd.xlane.f32.xlu0 %v656_v17  ;;  %654 = vadd.xlane.f32.xlu1 %v653_v22 }
 0x192   :  { %v580_v46 = vmul.f32 %v550_v43, %v1243_v50  ;;  %v579_v41 = vmul.f32 %v549_v9, %v1230_v45 }
 0x193   :  { %v490_v44 = vpop.permute.xlu1 %489  ;;  %v487_v34 = vpop.permute.xlu0 %486 }
 0x194   :  { %vm522_vm13 = vcmp.eq.s32.totalorder %v1330_v10, %v490_v44  ;;  %vm521_vm14 = vcmp.eq.s32.totalorder %v1330_v10, %v487_v34  ;;  %v662_v29 = vsel %vm71_vm0, %v580_v46, 0.0  ;;  %v659_v47 = vsel %vm71_vm0, %v579_v41, 0.0 }
 0x195   :  { %v552_v0 = vsel %vm522_vm13, 0.903125, %v864_v55  ;;  %v551_v56 = vsel %vm521_vm14, 0.903125, %v864_v55  ;;  %663 = vadd.xlane.f32.xlu0 %v662_v29  ;;  %660 = vadd.xlane.f32.xlu1 %v659_v47 }
 0x196   :  { %v582_v50 = vmul.f32 %v552_v0, %v1253_v54  ;;  %v581_v45 = vmul.f32 %v551_v56, %v1240_v49  ;;  %v804_v49 = vpop.eup %803  ;;  %835 = vlog2.f32 %v1400_v59 }
 0x197   :  { %v493_v26 = vpop.permute.xlu0 %492  ;;  %v806_v54 = vpop.eup %805  ;;  %837 = vlog2.f32 %v1402_v63 }
 0x198   :  { %vm523_vm15 = vcmp.eq.s32.totalorder %v1330_v10, %v493_v26  ;;  %v668_v21 = vsel %vm71_vm0, %v582_v50, 0.0  ;;  %v665_v18 = vsel %vm71_vm0, %v581_v45, 0.0  ;;  %v343_v10 = vmul.f32 0.6931472, %v804_v49 }
 0x199   :  { %v553_v38 = vsel %vm523_vm15, 0.903125, %v864_v55  ;;  %669 = vadd.xlane.f32.xlu0 %v668_v21  ;;  %666 = vadd.xlane.f32.xlu1 %v665_v18  ;;  %v345_v55 = vmul.f32 0.6931472, %v806_v54 }
 0x19a   :  { %v583_v33 = vmul.f32 %v553_v38, %v1250_v53  ;;  %v808_v53 = vpop.eup %807  ;;  %839 = vlog2.f32 %v1404_v3 }
 0x19b   :  { %v810_v61 = vpop.eup %809  ;;  %v347_v1 = vmul.f32 0.6931472, %v808_v53  ;;  %841 = vlog2.f32 %v1406_v4 }
 0x19c   :  { %v671_v32 = vsel %vm71_vm0, %v583_v33, 0.0  ;;  %vm704_vm0 = vcmask 7168   ;;  %v812_v20 = vpop.eup %811  ;;  %v349_v23 = vmul.f32 0.6931472, %v810_v61  ;;  %843 = vlog2.f32 %v1408_v8 }
 0x19d   :  { %672 = vadd.xlane.f32.xlu1 %v671_v32  ;;  %v814_v35 = vpop.eup %813  ;;  %v351_v37 = vmul.f32 0.6931472, %v812_v20  ;;  %845 = vlog2.f32 %v1410_v11 }
 0x19e   :  { %v816_v42 = vpop.eup %815  ;;  %v353_v40 = vmul.f32 0.6931472, %v814_v35  ;;  %847 = vlog2.f32 %v1412_v31 }
 0x19f   :  { %v818_v25 = vpop.eup %817  ;;  %v355_v46 = vmul.f32 0.6931472, %v816_v42  ;;  %849 = vlog2.f32 %v1414_v19 }
 0x1a0   :  { %v357_v9 = vmul.f32 0.6931472, %v818_v25  ;;  %v820_v41 = vpop.eup %819  ;;  %851 = vlog2.f32 %v1416_v12 }
 0x1a1   :  { %v359_v0 = vmul.f32 0.6931472, %v820_v41  ;;  %v822_v45 = vpop.eup %821  ;;  %853 = vlog2.f32 %v1418_v15 }
 0x1a2   :  { %v824_v26 = vpop.eup %823  ;;  %v361_v18 = vmul.f32 0.6931472, %v822_v45  ;;  %855 = vlog2.f32 %v1420_v28 }
 0x1a3   :  { %v826_v21 = vpop.eup %825  ;;  %v363_v38 = vmul.f32 0.6931472, %v824_v26  ;;  %857 = vlog2.f32 %v1422_v24 }
 0x1a4   :  { %v828_v48 = vpop.eup %827  ;;  %v365_v60 = vmul.f32 0.6931472, %v826_v21  ;;  %859 = vlog2.f32 %v1424_v16 }
 0x1a5   :  { %v830_v14 = vpop.eup %829  ;;  %v367_v62 = vmul.f32 0.6931472, %v828_v48  ;;  %861 = vlog2.f32 %v1426_v27 }
 0x1a6   :  { %v832_v59 = vpop.eup %831  ;;  %v369_v53 = vmul.f32 0.6931472, %v830_v14 }
 0x1a7   :  { %v834_v54 = vpop.eup %833 }
 0x1c4   :  { %v586_v5 = vpop.xlane.xlu1 %585  ;;  %v589_v36 = vpop.xlane.xlu0 %588 }
 0x1c5   :  { %v674_v7 = vsub.f32 %v343_v10, %v586_v5  ;;  %v675_v57 = vsub.f32 %v345_v55, %v589_v36  ;;  %v371_v10 = vmul.f32 0.6931472, %v832_v59  ;;  %v836_v55 = vpop.eup %835 }
 0x1c6   :  { %v838_v36 = vpop.eup %837 }
 0x1c7   :  { %705 = vst.msk [vmem:[%s1664_s2] sm:$0xff] %vm704_vm0, %v674_v7  ;;  %706 = vst.msk [vmem:[%s1664_s2 + $0x8] sm:$0xff] %vm704_vm0, %v675_v57  ;;  %v373_v7 = vmul.f32 0.6931472, %v834_v54  ;;  %v375_v57 = vmul.f32 0.6931472, %v836_v55  ;;  %v840_v20 = vpop.eup %839 }
 0x1c8   :  { %v595_v6 = vpop.xlane.xlu1 %594  ;;  %v592_v58 = vpop.xlane.xlu0 %591 }
 0x1c9   :  { %v677_v39 = vsub.f32 %v349_v23, %v595_v6  ;;  %v676_v30 = vsub.f32 %v347_v1, %v592_v58  ;;  %v842_v35 = vpop.eup %841  ;;  %v377_v6 = vmul.f32 0.6931472, %v838_v36  ;;  %v379_v58 = vmul.f32 0.6931472, %v840_v20 }
 0x1cb   :  { %708 = vst.msk [vmem:[%s1664_s2 + $0x18] sm:$0xff] %vm704_vm0, %v677_v39  ;;  %707 = vst.msk [vmem:[%s1664_s2 + $0x10] sm:$0xff] %vm704_vm0, %v676_v30  ;;  %v844_v39 = vpop.eup %843 }
 0x1cc   :  { %v601_v2 = vpop.xlane.xlu1 %600  ;;  %v598_v17 = vpop.xlane.xlu0 %597  ;;  %v383_v25 = vmul.f32 0.6931472, %v844_v39 }
 0x1cd   :  { %v679_v22 = vsub.f32 %v353_v40, %v601_v2  ;;  %v678_v43 = vsub.f32 %v351_v37, %v598_v17  ;;  %v846_v40 = vpop.eup %845  ;;  %v381_v37 = vmul.f32 0.6931472, %v842_v35 }
 0x1ce   :  { %v848_v2 = vpop.eup %847 }
 0x1cf   :  { %710 = vst.msk [vmem:[%s1664_s2 + $0x28] sm:$0xff] %vm704_vm0, %v679_v22  ;;  %709 = vst.msk [vmem:[%s1664_s2 + $0x20] sm:$0xff] %vm704_vm0, %v678_v43  ;;  %v850_v43 = vpop.eup %849 }
 0x1d0   :  { %v607_v44 = vpop.xlane.xlu1 %606  ;;  %v604_v34 = vpop.xlane.xlu0 %603 }
 0x1d1   :  { %v681_v29 = vsub.f32 %v357_v9, %v607_v44  ;;  %v680_v47 = vsub.f32 %v355_v46, %v604_v34  ;;  %v385_v9 = vmul.f32 0.6931472, %v846_v40  ;;  %v387_v46 = vmul.f32 0.6931472, %v848_v2  ;;  %v852_v41 = vpop.eup %851 }
 0x1d2   :  { %v854_v16 = vpop.eup %853 }
 0x1d3   :  { %712 = vst.msk [vmem:[%s1664_s2 + $0x38] sm:$0xff] %vm704_vm0, %v681_v29  ;;  %711 = vst.msk [vmem:[%s1664_s2 + $0x30] sm:$0xff] %vm704_vm0, %v680_v47  ;;  %v389_v47 = vmul.f32 0.6931472, %v850_v43  ;;  %v393_v27 = vmul.f32 0.6931472, %v854_v16 }
 0x1d4   :  { %v610_v56 = vpop.xlane.xlu0 %609 }
 0x1d5   :  { %v682_v50 = vsub.f32 %v359_v0, %v610_v56  ;;  %v391_v0 = vmul.f32 0.6931472, %v852_v41  ;;  %v856_v56 = vpop.eup %855 }
 0x1d7   :  { %713 = vst.msk [vmem:[%s1664_s2 + $0x40] sm:$0xff] %vm704_vm0, %v682_v50 }
 0x202   :  { %v613_v33 = vpop.xlane.xlu1 %612  ;;  %v616_v51 = vpop.xlane.xlu0 %615 }
 0x203   :  { %v683_v52 = vsub.f32 %v361_v18, %v613_v33  ;;  %v684_v13 = vsub.f32 %v363_v38, %v616_v51  ;;  %v858_v18 = vpop.eup %857  ;;  %v395_v38 = vmul.f32 0.6931472, %v856_v56 }
 0x204   :  { %v860_v48 = vpop.eup %859  ;;  %v397_v14 = vmul.f32 0.6931472, %v858_v18 }
 0x205   :  { %714 = vst.msk [vmem:[%s1664_s2 + $0x48] sm:$0xff] %vm704_vm0, %v683_v52  ;;  %715 = vst.msk [vmem:[%s1664_s2 + $0x50] sm:$0xff] %vm704_vm0, %v684_v13 }
 0x206   :  { %v619_v32 = vpop.xlane.xlu1 %618  ;;  %v622_v63 = vpop.xlane.xlu0 %621 }
 0x207   :  { %v685_v49 = vsub.f32 %v365_v60, %v619_v32  ;;  %v686_v3 = vsub.f32 %v367_v62, %v622_v63  ;;  %v399_v60 = vmul.f32 0.6931472, %v860_v48  ;;  %v862_v62 = vpop.eup %861 }
 0x209   :  { %716 = vst.msk [vmem:[%s1664_s2 + $0x58] sm:$0xff] %vm704_vm0, %v685_v49  ;;  %717 = vst.msk [vmem:[%s1664_s2 + $0x60] sm:$0xff] %vm704_vm0, %v686_v3  ;;  %v401_v3 = vmul.f32 0.6931472, %v862_v62 }
 0x20a   :  { %v625_v61 = vpop.xlane.xlu1 %624  ;;  %v628_v4 = vpop.xlane.xlu0 %627 }
 0x20b   :  { %v687_v5 = vsub.f32 %v369_v53, %v625_v61  ;;  %v688_v8 = vsub.f32 %v371_v10, %v628_v4 }
 0x20d   :  { %718 = vst.msk [vmem:[%s1664_s2 + $0x68] sm:$0xff] %vm704_vm0, %v687_v5  ;;  %719 = vst.msk [vmem:[%s1664_s2 + $0x70] sm:$0xff] %vm704_vm0, %v688_v8 }
 0x20e   :  { %v631_v23 = vpop.xlane.xlu1 %630  ;;  %v634_v11 = vpop.xlane.xlu0 %633 }
 0x20f   :  { %v689_v1 = vsub.f32 %v373_v7, %v631_v23  ;;  %v690_v31 = vsub.f32 %v375_v57, %v634_v11 }
 0x211   :  { %720 = vst.msk [vmem:[%s1664_s2 + $0x78] sm:$0xff] %vm704_vm0, %v689_v1  ;;  %721 = vst.msk [vmem:[%s1664_s2 + $0x80] sm:$0xff] %vm704_vm0, %v690_v31 }
 0x212   :  { %v637_v30 = vpop.xlane.xlu1 %636  ;;  %v640_v19 = vpop.xlane.xlu0 %639 }
 0x213   :  { %v691_v42 = vsub.f32 %v377_v6, %v637_v30  ;;  %v692_v12 = vsub.f32 %v379_v58, %v640_v19 }
 0x215   :  { %722 = vst.msk [vmem:[%s1664_s2 + $0x88] sm:$0xff] %vm704_vm0, %v691_v42  ;;  %723 = vst.msk [vmem:[%s1664_s2 + $0x90] sm:$0xff] %vm704_vm0, %v692_v12 }
 0x216   :  { %v643_v17 = vpop.xlane.xlu1 %642  ;;  %v646_v15 = vpop.xlane.xlu0 %645 }
 0x217   :  { %v693_v22 = vsub.f32 %v381_v37, %v643_v17  ;;  %v694_v28 = vsub.f32 %v383_v25, %v646_v15 }
 0x219   :  { %724 = vst.msk [vmem:[%s1664_s2 + $0x98] sm:$0xff] %vm704_vm0, %v693_v22  ;;  %725 = vst.msk [vmem:[%s1664_s2 + $0xa0] sm:$0xff] %vm704_vm0, %v694_v28 }
 0x21a   :  { %v649_v44 = vpop.xlane.xlu1 %648  ;;  %v652_v24 = vpop.xlane.xlu0 %651 }
 0x21b   :  { %v695_v34 = vsub.f32 %v385_v9, %v649_v44  ;;  %v696_v29 = vsub.f32 %v387_v46, %v652_v24 }
 0x21d   :  { %726 = vst.msk [vmem:[%s1664_s2 + $0xa8] sm:$0xff] %vm704_vm0, %v695_v34  ;;  %727 = vst.msk [vmem:[%s1664_s2 + $0xb0] sm:$0xff] %vm704_vm0, %v696_v29 }
 0x21e   :  { %v655_v50 = vpop.xlane.xlu1 %654  ;;  %v658_v45 = vpop.xlane.xlu0 %657 }
 0x21f   :  { %v697_v26 = vsub.f32 %v389_v47, %v655_v50  ;;  %v698_v21 = vsub.f32 %v391_v0, %v658_v45 }
 0x221   :  { %728 = vst.msk [vmem:[%s1664_s2 + $0xb8] sm:$0xff] %vm704_vm0, %v697_v26  ;;  %729 = vst.msk [vmem:[%s1664_s2 + $0xc0] sm:$0xff] %vm704_vm0, %v698_v21 }
 0x222   :  { %v661_v33 = vpop.xlane.xlu1 %660  ;;  %v664_v51 = vpop.xlane.xlu0 %663 }
 0x223   :  { %v699_v52 = vsub.f32 %v393_v27, %v661_v33  ;;  %v700_v13 = vsub.f32 %v395_v38, %v664_v51 }
 0x225   :  { %730 = vst.msk [vmem:[%s1664_s2 + $0xc8] sm:$0xff] %vm704_vm0, %v699_v52  ;;  %731 = vst.msk [vmem:[%s1664_s2 + $0xd0] sm:$0xff] %vm704_vm0, %v700_v13 }
 0x226   :  { %v667_v59 = vpop.xlane.xlu1 %666  ;;  %v670_v32 = vpop.xlane.xlu0 %669 }
 0x227   :  { %v701_v63 = vsub.f32 %v397_v14, %v667_v59  ;;  %v702_v49 = vsub.f32 %v399_v60, %v670_v32 }
 0x229   :  { %732 = vst.msk [vmem:[%s1664_s2 + $0xd8] sm:$0xff] %vm704_vm0, %v701_v63  ;;  %733 = vst.msk [vmem:[%s1664_s2 + $0xe0] sm:$0xff] %vm704_vm0, %v702_v49 }
 0x22a   :  { %v673_v54 = vpop.xlane.xlu1 %672 }
 0x22b   :  { %v703_v53 = vsub.f32 %v401_v3, %v673_v54 }
 0x22d   :  { %734 = vst.msk [vmem:[%s1664_s2 + $0xe8] sm:$0xff] %vm704_vm0, %v703_v53 }

</bundles_post_ra>
